<compile_context>
chip_gen: v5e
topology: v5e:2x2
jax: 0.10.0
libtpu: 0.0.40
codegen_flags: <defaults>
</compile_context>

<pallas_src>
import jax
import jax.numpy as jnp
from jax.experimental import pallas as pl
from jax.experimental.pallas import tpu as pltpu


# ---------------------------------------------------------------------------
# Fused kernel: one routing instance per grid step, everything in VMEM.
# ---------------------------------------------------------------------------
def _ave_d_loss_kernel(x_ref, w1p_ref, par_ref, final_ref, delay_ref, flat_ref):
    M, N = x_ref.shape[1], x_ref.shape[2]

    x = x_ref[0, :, :].astype(jnp.float32)            # (M, N)
    loads = par_ref[3:4, 0:N]                          # (1, N)  replicated load row

    # --- column-wise (dim 0), numerically stable softmax --------------------
    x_max = jnp.max(x, axis=0, keepdims=True)          # (1, N)
    e = jnp.exp(x - x_max)                              # (M, N)
    denom = jnp.sum(e, axis=0, keepdims=True)           # (1, N)
    inv = pl.reciprocal(denom, approx=False)             # exact; approx gain is noise here
    p = e * inv                                           # x_portion, never leaves VMEM

    # --- x_final = x_portion * load_mtx  (all load_mtx rows == loads) -------
    final_ref[0, :, :] = (p * loads).astype(final_ref.dtype)

    # --- flatten p row-major -> (1, M*N) via a tiny VMEM scratch bounce -----
    # (M static masked sub-lane stores + 1 load; avoids vector reshape lowering)
    for m in range(M):
        flat_ref[:, pl.ds(m * N, N)] = p[m:m + 1, :]
    p_flat = flat_ref[...]                               # (1, M*N)

    # --- delay net layer 1: ONE K = M*N MXU dot ------------------------------
    # The load branch + b1 are pre-folded host-side into par_ref[0] (b1_eff).
    h = par_ref[0:1, :] + jnp.dot(p_flat, w1p_ref[...],
                                  preferred_element_type=jnp.float32)
    h = jnp.maximum(h, 0.0)                               # ReLU hidden layer

    # --- delay net layer 2 on the VPU: multiply + lane reduce, + b2, negate --
    y = jnp.sum(h * par_ref[1:2, :], axis=-1, keepdims=True) + par_ref[2:3, 0:1]
    delay_ref[0, :, :] = -y                               # (1, 1)


# ---------------------------------------------------------------------------
# Wrapper: batched forward.  in_x: (B, M, N).
# ---------------------------------------------------------------------------
def ave_d_loss_forward(in_x, w1_portion, params_packed):
    B, M, N = in_x.shape
    D = M * N
    H = params_packed.shape[1]

    x_final, delay = pl.pallas_call(
        _ave_d_loss_kernel,
        out_shape=(jax.ShapeDtypeStruct((B, M, N), in_x.dtype),
                   jax.ShapeDtypeStruct((B, 1, 1), jnp.float32)),
        grid=(B,),
        in_specs=[pl.BlockSpec((1, M, N), lambda b: (b, 0, 0)),
                  pl.BlockSpec((D, H), lambda b: (0, 0)),      # stays VMEM-resident
                  pl.BlockSpec((4, H), lambda b: (0, 0))],     # stays VMEM-resident
        out_specs=(pl.BlockSpec((1, M, N), lambda b: (b, 0, 0)),
                   pl.BlockSpec((1, 1, 1), lambda b: (b, 0, 0))),
        scratch_shapes=[pltpu.VMEM((1, D), jnp.float32)],
        compiler_params=pltpu.CompilerParams(
            dimension_semantics=("parallel",)),                # shards batch across TCs (v7x)
    )(in_x, w1_portion, params_packed)

    return x_final, delay[:, 0, 0]


# ---------------------------------------------------------------------------
# Module-constant folding (the "__init__" work of the PyTorch module).
# ---------------------------------------------------------------------------
def build_kernel_params(loads, w1a_2d, w1b_2d, b1, w2, b2, n_node_in):
    """Fold fixed buffers.  ONLY valid because load_mtx = tile(loads, (M, 1))."""
    M = n_node_in
    N = loads.shape[-1]
    D = M * N
    H = b1.shape[-1]
    assert H >= N, "loads row is packed into the (4, H) param slab"

    load_mtx = jnp.tile(loads, (M, 1))                   # loads.repeat([N_node_in, 1])
    # Precondition for the load-branch fold below (perf-review correctness note).
    assert bool(jnp.all(load_mtx == jnp.broadcast_to(loads, (M, N))))

    load_flat = load_mtx.reshape(1, D)
    b1_eff = b1 + jnp.dot(load_flat, w1a_2d, precision=jax.lax.Precision.HIGHEST)

    params = jnp.zeros((4, H), jnp.float32)
    params = params.at[0, :].set(b1_eff[0])              # b1 + load_flat @ W1a
    params = params.at[1, :].set(w2[:, 0])               # w2 as a lane-dense row
    params = params.at[2, 0].set(b2[0, 0])               # b2 scalar
    params = params.at[3, :N].set(loads[0])              # loads row (for x_final)
    return w1b_2d, params, load_mtx


# Pure-JAX reference (flat (M*N, H) weights, exactly like the PyTorch net)
def _reference_single(in_x, load_mtx, flat_params):
    w1a, w1b, b1, w2, b2 = flat_params
    p = jax.nn.softmax(in_x, axis=0)
    x_final = p * load_mtx
    M, N = in_x.shape
    lf = load_mtx.reshape(1, M * N)
    pf = p.reshape(1, M * N)
    h = jnp.maximum(
        jnp.dot(lf, w1a, precision=jax.lax.Precision.HIGHEST)
        + jnp.dot(pf, w1b, precision=jax.lax.Precision.HIGHEST) + b1, 0.0)
    y = jnp.dot(h, w2, precision=jax.lax.Precision.HIGHEST) + b2
    return x_final, (-y)[0, 0]


if __name__ == "__main__":
    # Small shapes consistent with the module: N_node_in x N_node_out routing matrix,
    # a small batch of independent routing instances.
    N_IN, N_OUT, HIDDEN, BATCH = 8, 8, 32, 4
    key = jax.random.PRNGKey(0)
    k_x, k_loads, k_w1, k_b1, k_w2, k_b2 = jax.random.split(key, 6)

    in_x = jax.random.normal(k_x, (BATCH, N_IN, N_OUT), dtype=jnp.float32)
    loads = jax.random.uniform(k_loads, (1, N_OUT), dtype=jnp.float32)

    D = N_IN * N_OUT                                     # per-branch flat size
    # Deterministic net params: W1 acts on concat(loads_flat, portion_flat) -> split.
    w1 = jax.random.normal(k_w1, (2 * D, HIDDEN), dtype=jnp.float32) * (1.0 / jnp.sqrt(2.0 * D))
    w1a_2d, w1b_2d = w1[:D, :], w1[D:, :]
    b1 = jax.random.normal(k_b1, (1, HIDDEN), dtype=jnp.float32) * 0.01
    w2 = jax.random.normal(k_w2, (HIDDEN, 1), dtype=jnp.float32) * (1.0 / jnp.sqrt(HIDDEN))
    b2 = jax.random.normal(k_b2, (1, 1), dtype=jnp.float32) * 0.01

    w1_portion, params_packed, load_mtx = build_kernel_params(
        loads, w1a_2d, w1b_2d, b1, w2, b2, N_IN)

    x_final, ave_delay = ave_d_loss_forward(in_x, w1_portion, params_packed)
    jax.block_until_ready((x_final, ave_delay))

    ref_fn = jax.vmap(lambda x: _reference_single(x, load_mtx, (w1a_2d, w1b_2d, b1, w2, b2)))
    x_final_ref, ave_delay_ref = ref_fn(in_x)

    assert x_final.shape == (BATCH, N_IN, N_OUT) and ave_delay.shape == (BATCH,)
    assert jnp.allclose(x_final, x_final_ref, atol=1e-5, rtol=1e-5)
    # ave_delay contracts K=M*N on the MXU vs. an XLA dot in the reference -> allow
    # a slightly looser tolerance for the different accumulation path.
    assert jnp.allclose(ave_delay, ave_delay_ref, atol=1e-4, rtol=1e-4)

    print("KERNEL_OK")
</pallas_src>

<mosaic_0001>
module attributes {stable_mosaic.version = 11 : i64} {
  func.func @_ave_d_loss_kernel(%arg0: i32, %arg1: memref<1x8x8xf32, #tpu.memory_space<vmem>>, %arg2: memref<64x32xf32, #tpu.memory_space<vmem>>, %arg3: memref<4x32xf32, #tpu.memory_space<vmem>>, %arg4: memref<1x8x8xf32, #tpu.memory_space<vmem>>, %arg5: memref<1x1x1xf32, #tpu.memory_space<vmem>>, %arg6: memref<1x64xf32, #tpu.memory_space<vmem>>) attributes {dimension_semantics = [#tpu.dimension_semantics<parallel>], iteration_bounds = array<i64: 4>, scalar_prefetch = 0 : i64, scratch_operands = 1 : i64, tpu.core_type = #tpu.core_type<tc>, window_params = [{transform_indices = @transform_0, window_bounds = array<i64: 1, 8, 8>}, {pipeline_mode = #tpu.pipeline_mode<synchronous>, transform_indices = @transform_1, window_bounds = array<i64: 64, 32>}, {pipeline_mode = #tpu.pipeline_mode<synchronous>, transform_indices = @transform_2, window_bounds = array<i64: 4, 32>}, {transform_indices = @transform_3, window_bounds = array<i64: 1, 8, 8>}, {transform_indices = @transform_4, window_bounds = array<i64: 1, 1, 1>}]} {
    %c0 = arith.constant 0 : index
    %c0_0 = arith.constant 0 : index
    %c0_1 = arith.constant 0 : index
    %0 = vector.load %arg1[%c0, %c0_0, %c0_1] : memref<1x8x8xf32, #tpu.memory_space<vmem>>, vector<1x8x8xf32>
    %1 = vector.shape_cast %0 : vector<1x8x8xf32> to vector<8x8xf32>
    %c3 = arith.constant 3 : index
    %c0_2 = arith.constant 0 : index
    %2 = vector.load %arg3[%c3, %c0_2] : memref<4x32xf32, #tpu.memory_space<vmem>>, vector<1x8xf32>
    %cst = arith.constant dense<0xFF800000> : vector<8xf32>
    %3 = vector.multi_reduction <maximumf>, %1, %cst [0] : vector<8x8xf32> to vector<8xf32>
    %4 = vector.shape_cast %3 : vector<8xf32> to vector<1x8xf32>
    %5 = vector.broadcast %4 : vector<1x8xf32> to vector<8x8xf32>
    %6 = arith.subf %1, %5 : vector<8x8xf32>
    %7 = math.exp %6 : vector<8x8xf32>
    %cst_3 = arith.constant dense<0.000000e+00> : vector<8xf32>
    %8 = vector.multi_reduction <add>, %7, %cst_3 [0] : vector<8x8xf32> to vector<8xf32>
    %9 = vector.shape_cast %8 : vector<8xf32> to vector<1x8xf32>
    %10 = tpu.reciprocal %9 : vector<1x8xf32> -> vector<1x8xf32>
    %11 = vector.broadcast %10 : vector<1x8xf32> to vector<8x8xf32>
    %12 = arith.mulf %7, %11 : vector<8x8xf32>
    %13 = vector.broadcast %2 : vector<1x8xf32> to vector<8x8xf32>
    %14 = arith.mulf %12, %13 : vector<8x8xf32>
    %c0_4 = arith.constant 0 : index
    %c0_5 = arith.constant 0 : index
    %c0_6 = arith.constant 0 : index
    %15 = vector.load %arg4[%c0_4, %c0_5, %c0_6] : memref<1x8x8xf32, #tpu.memory_space<vmem>>, vector<1x8x8xf32>
    %16 = vector.shape_cast %15 : vector<1x8x8xf32> to vector<8x8xf32>
    %17 = vector.shape_cast %14 : vector<8x8xf32> to vector<1x8x8xf32>
    tpu.vector_store %arg4[%c0_4, %c0_5, %c0_6], %17 {strides = array<i32>} : memref<1x8x8xf32, #tpu.memory_space<vmem>>, vector<1x8x8xf32>,
    %18 = vector.extract_strided_slice %12 {offsets = [0, 0], sizes = [1, 8], strides = [1, 1]} : vector<8x8xf32> to vector<1x8xf32>
    %c0_7 = arith.constant 0 : index
    %c0_8 = arith.constant 0 : index
    %19 = vector.load %arg6[%c0_7, %c0_8] : memref<1x64xf32, #tpu.memory_space<vmem>>, vector<1x8xf32>
    tpu.vector_store %arg6[%c0_7, %c0_8], %18 {strides = array<i32>} : memref<1x64xf32, #tpu.memory_space<vmem>>, vector<1x8xf32>,
    %20 = vector.extract_strided_slice %12 {offsets = [1, 0], sizes = [1, 8], strides = [1, 1]} : vector<8x8xf32> to vector<1x8xf32>
    %c0_9 = arith.constant 0 : index
    %c8 = arith.constant 8 : index
    %21 = vector.load %arg6[%c0_9, %c8] : memref<1x64xf32, #tpu.memory_space<vmem>>, vector<1x8xf32>
    tpu.vector_store %arg6[%c0_9, %c8], %20 {strides = array<i32>} : memref<1x64xf32, #tpu.memory_space<vmem>>, vector<1x8xf32>,
    %22 = vector.extract_strided_slice %12 {offsets = [2, 0], sizes = [1, 8], strides = [1, 1]} : vector<8x8xf32> to vector<1x8xf32>
    %c0_10 = arith.constant 0 : index
    %c16 = arith.constant 16 : index
    %23 = vector.load %arg6[%c0_10, %c16] : memref<1x64xf32, #tpu.memory_space<vmem>>, vector<1x8xf32>
    tpu.vector_store %arg6[%c0_10, %c16], %22 {strides = array<i32>} : memref<1x64xf32, #tpu.memory_space<vmem>>, vector<1x8xf32>,
    %24 = vector.extract_strided_slice %12 {offsets = [3, 0], sizes = [1, 8], strides = [1, 1]} : vector<8x8xf32> to vector<1x8xf32>
    %c0_11 = arith.constant 0 : index
    %c24 = arith.constant 24 : index
    %25 = vector.load %arg6[%c0_11, %c24] : memref<1x64xf32, #tpu.memory_space<vmem>>, vector<1x8xf32>
    tpu.vector_store %arg6[%c0_11, %c24], %24 {strides = array<i32>} : memref<1x64xf32, #tpu.memory_space<vmem>>, vector<1x8xf32>,
    %26 = vector.extract_strided_slice %12 {offsets = [4, 0], sizes = [1, 8], strides = [1, 1]} : vector<8x8xf32> to vector<1x8xf32>
    %c0_12 = arith.constant 0 : index
    %c32 = arith.constant 32 : index
    %27 = vector.load %arg6[%c0_12, %c32] : memref<1x64xf32, #tpu.memory_space<vmem>>, vector<1x8xf32>
    tpu.vector_store %arg6[%c0_12, %c32], %26 {strides = array<i32>} : memref<1x64xf32, #tpu.memory_space<vmem>>, vector<1x8xf32>,
    %28 = vector.extract_strided_slice %12 {offsets = [5, 0], sizes = [1, 8], strides = [1, 1]} : vector<8x8xf32> to vector<1x8xf32>
    %c0_13 = arith.constant 0 : index
    %c40 = arith.constant 40 : index
    %29 = vector.load %arg6[%c0_13, %c40] : memref<1x64xf32, #tpu.memory_space<vmem>>, vector<1x8xf32>
    tpu.vector_store %arg6[%c0_13, %c40], %28 {strides = array<i32>} : memref<1x64xf32, #tpu.memory_space<vmem>>, vector<1x8xf32>,
    %30 = vector.extract_strided_slice %12 {offsets = [6, 0], sizes = [1, 8], strides = [1, 1]} : vector<8x8xf32> to vector<1x8xf32>
    %c0_14 = arith.constant 0 : index
    %c48 = arith.constant 48 : index
    %31 = vector.load %arg6[%c0_14, %c48] : memref<1x64xf32, #tpu.memory_space<vmem>>, vector<1x8xf32>
    tpu.vector_store %arg6[%c0_14, %c48], %30 {strides = array<i32>} : memref<1x64xf32, #tpu.memory_space<vmem>>, vector<1x8xf32>,
    %32 = vector.extract_strided_slice %12 {offsets = [7, 0], sizes = [1, 8], strides = [1, 1]} : vector<8x8xf32> to vector<1x8xf32>
    %c0_15 = arith.constant 0 : index
    %c56 = arith.constant 56 : index
    %33 = vector.load %arg6[%c0_15, %c56] : memref<1x64xf32, #tpu.memory_space<vmem>>, vector<1x8xf32>
    tpu.vector_store %arg6[%c0_15, %c56], %32 {strides = array<i32>} : memref<1x64xf32, #tpu.memory_space<vmem>>, vector<1x8xf32>,
    %c0_16 = arith.constant 0 : index
    %c0_17 = arith.constant 0 : index
    %34 = vector.load %arg6[%c0_16, %c0_17] : memref<1x64xf32, #tpu.memory_space<vmem>>, vector<1x64xf32>
    %c0_18 = arith.constant 0 : index
    %c0_19 = arith.constant 0 : index
    %35 = vector.load %arg3[%c0_18, %c0_19] : memref<4x32xf32, #tpu.memory_space<vmem>>, vector<1x32xf32>
    %c0_20 = arith.constant 0 : index
    %c0_21 = arith.constant 0 : index
    %36 = vector.load %arg2[%c0_20, %c0_21] : memref<64x32xf32, #tpu.memory_space<vmem>>, vector<64x32xf32>
    %cst_22 = arith.constant dense<0.000000e+00> : vector<1x32xf32>
    %37 = tpu.matmul %34, %36, %cst_22 {dimension_numbers = #tpu.dot_dimension_numbers<[1], [0], [0], [1], [0, 0, 1, 1], [], []>} : vector<1x64xf32>, vector<64x32xf32>, vector<1x32xf32> -> vector<1x32xf32>
    %38 = arith.addf %35, %37 : vector<1x32xf32>
    %cst_23 = arith.constant 0.000000e+00 : f32
    %39 = vector.broadcast %cst_23 : f32 to vector<1x32xf32>
    %40 = arith.maximumf %38, %39 : vector<1x32xf32>
    %c1 = arith.constant 1 : index
    %c0_24 = arith.constant 0 : index
    %41 = vector.load %arg3[%c1, %c0_24] : memref<4x32xf32, #tpu.memory_space<vmem>>, vector<1x32xf32>
    %42 = arith.mulf %40, %41 : vector<1x32xf32>
    %cst_25 = arith.constant dense<0.000000e+00> : vector<1xf32>
    %43 = vector.multi_reduction <add>, %42, %cst_25 [1] : vector<1x32xf32> to vector<1xf32>
    %44 = vector.shape_cast %43 : vector<1xf32> to vector<1x1xf32>
    %c2 = arith.constant 2 : index
    %c0_26 = arith.constant 0 : index
    %45 = vector.load %arg3[%c2, %c0_26] : memref<4x32xf32, #tpu.memory_space<vmem>>, vector<1x1xf32>
    %46 = arith.addf %44, %45 : vector<1x1xf32>
    %cst_27 = arith.constant 0.000000e+00 : f32
    %47 = vector.broadcast %cst_27 : f32 to vector<1x1xf32>
    %48 = arith.subf %47, %46 : vector<1x1xf32>
    %c0_28 = arith.constant 0 : index
    %c0_29 = arith.constant 0 : index
    %c0_30 = arith.constant 0 : index
    %49 = vector.load %arg5[%c0_28, %c0_29, %c0_30] : memref<1x1x1xf32, #tpu.memory_space<vmem>>, vector<1x1x1xf32>
    %50 = vector.shape_cast %49 : vector<1x1x1xf32> to vector<1x1xf32>
    %51 = vector.shape_cast %48 : vector<1x1xf32> to vector<1x1x1xf32>
    tpu.vector_store %arg5[%c0_28, %c0_29, %c0_30], %51 {strides = array<i32>} : memref<1x1x1xf32, #tpu.memory_space<vmem>>, vector<1x1x1xf32>,
    return
  }
  func.func @transform_0(%arg0: i32) -> (i32, i32, i32) {
    %c0_i32 = arith.constant 0 : i32
    %c0_i32_0 = arith.constant 0 : i32
    %c0_i32_1 = arith.constant 0 : i32
    return %arg0, %c0_i32, %c0_i32_0 : i32, i32, i32
  }
  func.func @transform_1(%arg0: i32) -> (i32, i32) {
    %c0_i32 = arith.constant 0 : i32
    %c0_i32_0 = arith.constant 0 : i32
    %c0_i32_1 = arith.constant 0 : i32
    return %c0_i32, %c0_i32_0 : i32, i32
  }
  func.func @transform_2(%arg0: i32) -> (i32, i32) {
    %c0_i32 = arith.constant 0 : i32
    %c0_i32_0 = arith.constant 0 : i32
    %c0_i32_1 = arith.constant 0 : i32
    return %c0_i32, %c0_i32_0 : i32, i32
  }
  func.func @transform_3(%arg0: i32) -> (i32, i32, i32) {
    %c0_i32 = arith.constant 0 : i32
    %c0_i32_0 = arith.constant 0 : i32
    %c0_i32_1 = arith.constant 0 : i32
    return %arg0, %c0_i32, %c0_i32_0 : i32, i32, i32
  }
  func.func @transform_4(%arg0: i32) -> (i32, i32, i32) {
    %c0_i32 = arith.constant 0 : i32
    %c0_i32_0 = arith.constant 0 : i32
    %c0_i32_1 = arith.constant 0 : i32
    return %arg0, %c0_i32, %c0_i32_0 : i32, i32, i32
  }
}

</mosaic_0001>

<bundles_post_ra>
// kernel: tpu_custom_call.1
= control target key start
LH: loop header
LB: loop body
LE: loop exit
PB: predicated region body
PF: predicated region fallthrough
CT: control target
= control target key end

     0   :  { %10 = vsyncpa [#allocation4], 0  ;;  %s725_s0 = inlined_call_operand.vmem [shape: f32[4,8,8], index: 0, kind: input, shape index: {}]   ;;  %s726_s1 = inlined_call_operand.vmem [shape: f32[64,32], index: 1, kind: input, shape index: {}]   ;;  %s727_s2 = inlined_call_operand.vmem [shape: f32[4,32], index: 2, kind: input, shape index: {}]   ;;  %s728_s3 = inlined_call_operand.hbm [shape: f32[4,8,8], index: 3, kind: output, shape index: {0}]   ;;  %s729_s4 = inlined_call_operand.vmem [shape: f32[4,1,1], index: 4, kind: output, shape index: {1}]  }
   0x1   :  { %12 = vsyncpa [#allocation4 + $0x1], 0  ;;  %s583_s15 = smov 0   ;;  %s585_s16 = smov 0  }
   0x2   :  { %s587_s17 = smov 0   ;;  %s589_s18 = smov 0  }
   0x3 LB: > { %s604_s19 = sadd.s32 4294967295, %s549_s18   ;;  %s425_s20 = sadd.s32 4294967294, %s549_s18   ;;  %s549_s18 = sphi %s589_s18, %s735_s18   ;;  %s545_s17 = sphi %s587_s17, %s734_s17   ;;  %s541_s16 = sphi %s585_s16, %s733_s16   ;;  %s537_s15 = sphi %s583_s15, %s732_s15  }
   0x4   : > { %s608_s21 = sadd.s32 1, %s549_s18   ;;  %s93_s22 = sadd.s32 1, %s545_s17 }
   0x5   : > { %s90_s23 = ssub.s32 %s549_s18, %s608_s21  ;;  %p103_p0 = scmp.ne.s32.totalorder %s545_s17, %s541_s16 }
   0x6   : > { %p91_p1 = scmp.eq.s32.totalorder %s90_s23, 0  ;;  %p104_p2 = scmp.eq.s32.totalorder %s604_s19, 3 }
   0x7   : > { %p109_p3 = scmp.ne.s32.totalorder %s541_s16, %s537_s15  ;;  %p110_p4 = scmp.eq.s32.totalorder %s425_s20, 3 }
   0x8   : > { %s619_s24 = scalar_select %p91_p1, %s545_s17, %s93_s22  }
   0x9   : > { %p621_p5 = por %p104_p2, %p103_p0  ;;  %p625_p6 = por %p110_p4, %p109_p3 }
   0xa   : > { %p428_p7 = scmp.ge.s32.totalorder %s549_s18, 1  ;;  %p167_p8 = scmp.lt.s32.totalorder %s549_s18, 5 }
   0xc   : > { %p168_p9 = pnand %p428_p7, %p167_p8 }
   0xd   : > { %p195_p10 = scmp.lt.s32.totalorder (!%p168_p9), %s604_s19, 3  ;;  %s551_s6 = smov (!%p168_p9), 8  }
   0xe   : > { %171 = sbr.rel (%p168_p9) target bundleno = 473 (0x1d9), region = 32  ;;  %s552_s7 = smov (!%p168_p9), 24  }
   0xf   : > { %s553_s8 = smov (!%p168_p9), 40   ;;  %s554_s9 = smov (!%p168_p9), 16  }
  0x10   : > { %s555_s10 = smov (!%p168_p9), 32   ;;  %s556_s11 = smov (!%p168_p9), 48  }
  0x11   : > { %s557_s12 = smov (!%p168_p9), 56   ;;  %s187_s23 = sand.u32 (!%p168_p9), 1, %s541_s16  }
  0x12   : > { %s433_s29 = sshll.u32 (!%p168_p9), %s604_s19, 3  ;;  %s507_s22 = scalar_lea.hbm (!%p168_p9), %s728_s3, 32 }
  0x13   : > { %s633_s27 = scalar_select %p195_p10, %s604_s19, 3  ;;  %vm204_vm0 = vcmask 64512   ;;  %vm240_vm5 = vcmask 57344   ;;  %v287_v29 = vld [vmem:[%s726_s1 + $0x38] sm:$0xff]  ;;  %v286_v30 = vld [vmem:[%s726_s1 + $0x30] sm:$0xff]  ;;  %v285_v31 = vld [vmem:[%s726_s1 + $0x28] sm:$0xff] }
  0x14   : > { %300 = vmatpush.msra.mxu0 %v287_v29  ;;  %v284_v32 = vld [vmem:[%s726_s1 + $0x20] sm:$0xff]  ;;  %v283_v33 = vld [vmem:[%s726_s1 + $0x18] sm:$0xff]  ;;  %v282_v34 = vld [vmem:[%s726_s1 + $0x10] sm:$0xff]  ;;  %vm246_vm6 = vcmask 123969   ;;  %vm251_vm7 = vcmask 190594   ;;  %vm256_vm8 = vcmask 257219  }
  0x15   : > { %s430_s28 = sshll.u32 %s633_s27, 3  ;;  %v281_v35 = vld [vmem:[%s726_s1 + $0x8] sm:$0xff]  ;;  %v280_v36 = vld [vmem:[%s726_s1] sm:$0xff]  ;;  %vm261_vm9 = vcmask 323844   ;;  %vm266_vm10 = vcmask 390469   ;;  %vm271_vm11 = vcmask 457094  }
  0x16   : > { %s198_s5 = scalar_lea.vmem %s725_s0, %s430_s28  ;;  %301 = vmatpush.msra.mxu0 %v286_v30  ;;  %vm276_vm12 = vcmask 523719   ;;  %vm288_vm13 = vcmask 523264   ;;  %v279_v45 = vld [vmem:[%s727_s2] sm:$0x1]  ;;  %v314_v48 = vld [vmem:[%s727_s2 + $0x1] sm:$0x1] }
  0x17   : > { %v202_v0 = vld [vmem:[%s198_s5] sm:$0xff]  ;;  %vm316_vm14 = vcmask 253952   ;;  %s429_s28 = sshll.u32 %s187_s23, 3 }
  0x18   : > { %v205_v1 = vsel %vm204_vm0, %v202_v0, -inf  ;;  %302 = vmatpush.msra.mxu0 %v285_v31  ;;  %v482_v52 = vld [vmem:[%s727_s2 + $0x3] ss:$0 sm:$0xff] }
  0x19   : > { %v206_v2 = vrot.slane %v205_v1, 4 }
  0x1a   : > { %303 = vmatpush.msra.mxu0 %v284_v32 }
  0x1b   : > { %v207_v3 = vmax.f32 %v205_v1, %v206_v2 }
  0x1c   : > { %304 = vmatpush.msra.mxu0 %v283_v33 }
  0x1d   : > { %v208_v4 = vrot.slane %v207_v3, 2 }
  0x1e   : > { %305 = vmatpush.msra.mxu0 %v282_v34 }
  0x1f   : > { %v209_v5 = vmax.f32 %v207_v3, %v208_v4 }
  0x20   : > { %306 = vmatpush.msra.mxu0 %v281_v35 }
  0x21   : > { %v210_v6 = vrot.slane %v209_v5, 1 }
  0x22   : > { %307 = vmatpush.msra.mxu0 %v280_v36 }
  0x23   : > { %v211_v7 = vmax.f32 %v209_v5, %v210_v6 }
  0x25   : > { %v212_v8 = vsub.f32 %v202_v0, %v211_v7 }
  0x27   : > { %v213_v9 = vmul.f32 1.442695, %v212_v8 }
  0x29   : > { %483 = vpow2.f32 %v213_v9 }
  0x2f   : > { %v484_v10 = vpop.eup %483 }
  0x30   : > { %v215_v11 = vsel %vm204_vm0, %v484_v10, 0.0 }
  0x31   : > { %v216_v12 = vrot.slane %v215_v11, 4 }
  0x33   : > { %v217_v13 = vadd.f32 %v216_v12, %v215_v11 }
  0x35   : > { %v218_v14 = vrot.slane %v217_v13, 2 }
  0x37   : > { %v219_v15 = vadd.f32 %v218_v14, %v217_v13 }
  0x39   : > { %v220_v16 = vrot.slane %v219_v15, 1 }
  0x3b   : > { %v221_v17 = vadd.f32 %v220_v16, %v219_v15 }
  0x3d   : > { %485 = vrcp.f32 %v221_v17  ;;  %v233_v20 = vand.u32 2147483648, %v221_v17  ;;  %vm227_vm1 = vweird.f32 %v221_v17  ;;  %v231_v22 = vand.u32 2147483647, %v221_v17 }
  0x3f   : > { %v234_v24 = vor.u32 1.1754944e-38, %v233_v20  ;;  %vm232_vm4 = vcmp.eq.f32.partialorder %v231_v22, 8.507059e+37 }
  0x43   : > { %v486_v18 = vpop.eup %485 }
  0x44   : > { %v223_v19 = vmul.f32 %v486_v18, %v221_v17  ;;  %vm228_vm2 = vweird.f32 %v486_v18 }
  0x45   : > { %vm229_vm3 = vmor %vm227_vm1, %vm228_vm2 }
  0x46   : > { %v224_v21 = vsub.f32 1.0, %v223_v19 }
  0x48   : > { %v225_v23 = vmul.f32 %v486_v18, %v224_v21 }
  0x4a   : > { %v226_v25 = vadd.f32 %v486_v18, %v225_v23 }
  0x4c   : > { %v230_v26 = vsel %vm229_vm3, %v486_v18, %v226_v25 }
  0x4d   : > { %v235_v27 = vsel %vm232_vm4, %v234_v24, %v230_v26 }
  0x4e   : > { %v641_v28 = vmul.f32 %v484_v10, %v235_v27 }
  0x50   : > { %243 = vrot.lane.b32.xlu0 %v641_v28, %s551_s6  ;;  %253 = vrot.lane.b32.xlu1 %v641_v28, %s552_s7  ;;  %241 = vst.msk [vmem:[#allocation2] sm:$0x1] %vm240_vm5, %v641_v28  ;;  %s339_s6 = scalar_lea.hbm %s728_s3, %s433_s29  ;;  %s189_s7 = scalar_lea.vmem [#allocation3], %s429_s28  ;;  %v238_v53 = vmul.f32 %v482_v52, %v641_v28 }
  0x51   : > { %263 = vrot.lane.b32.xlu2 %v641_v28, %s553_s8  ;;  %s341_s8 = sshll.u32 %s189_s7, 4  ;;  %s342_s8 = int_to_ptr.vmem [resolvable:$true] %s341_s8 }
  0x52   : > { %239 = vst.msk [vmem:[%s189_s7] sm:$0xff] %vm204_vm0, %v238_v53 }
  0x58   : > { %248 = vrot.lane.b32.xlu0 %v641_v28, %s554_s9  ;;  %258 = vrot.lane.b32.xlu1 %v641_v28, %s555_s10  ;;  %s343_s9 = sshll.u32 %s339_s6, 4  ;;  %s344_s9 = int_to_ptr.hbm [resolvable:$true] %s343_s9 }
  0x59   : > { %268 = vrot.lane.b32.xlu2 %v641_v28, %s556_s11  ;;  %s501_s13 = sshra.s32 %s344_s9, 4  ;;  %s502_s13 = int_to_ptr.hbm [resolvable:$true] %s501_s13 }
  0x5a   : > { %s503_s19 = scalar_lea.hbm %s502_s13, 8  ;;  %p508_p0 = scmp.lt.s32.totalorder %s502_s13, %s728_s3 }
  0x5b   : > { %p504_p11 = scmp.ne.s32.totalorder %s502_s13, %s503_s19  ;;  %p509_p1 = scmp.lt.s32.totalorder %s507_s22, %s503_s19 }
  0x5d   : > { %p505_p12 = pnand %p504_p11, %p621_p5  ;;  %p510_p2 = por %p509_p1, %p508_p0 }
  0x5f   : > { %p506_p13 = pneg %p505_p12 }
  0x60   : > { %273 = vrot.lane.b32.xlu0 %v641_v28, %s557_s12  ;;  %s326_s12 = scalar_lea.sflag [#allocation4], %s187_s23 }
  0x61   : > { %p511_p3 = pnand %p510_p2, %p506_p13 }
  0xab   : > { %v264_v37 = vpop.permute.xlu2 %263 }
  0xb3   : > { %v269_v42 = vpop.permute.xlu2 %268 }
  0xc2   : > { %v244_v38 = vpop.permute.xlu0 %243  ;;  %v254_v39 = vpop.permute.xlu1 %253 }
  0xc3   : > { %247 = vst.msk [vmem:[#allocation2 - $0x1] sm:$0x2] %vm246_vm6, %v244_v38 }
  0xca   : > { %v249_v40 = vpop.permute.xlu0 %248  ;;  %v259_v41 = vpop.permute.xlu1 %258 }
  0xcb   : > { %252 = vst.msk [vmem:[#allocation2 - $0x2] sm:$0x4] %vm251_vm7, %v249_v40 }
  0xcc   : > { %257 = vst.msk [vmem:[#allocation2 - $0x3] sm:$0x8] %vm256_vm8, %v254_v39 }
  0xcd   : > { %262 = vst.msk [vmem:[#allocation2 - $0x4] sm:$0x10] %vm261_vm9, %v259_v41 }
  0xce   : > { %267 = vst.msk [vmem:[#allocation2 - $0x5] sm:$0x20] %vm266_vm10, %v264_v37 }
  0xcf   : > { %272 = vst.msk [vmem:[#allocation2 - $0x6] sm:$0x40] %vm271_vm11, %v269_v42 }
  0xd2   : > { %v274_v43 = vpop.permute.xlu0 %273 }
  0xd3   : > { %277 = vst.msk [vmem:[#allocation2 - $0x7] sm:$0x80] %vm276_vm12, %v274_v43 }
  0xda   : > { %v278_v44 = vld [vmem:[#allocation2] sm:$0x1] }
  0xdb   : > { %431 = vmatmul.msk.f32.vlgmr.msra.gmra.mxu0 %vm288_vm13, %v278_v44 }
 0x158   : > { %v309_v46 = vpop.f32.mrf.mxu0 }
 0x159   : > { %v312_v47 = vadd.f32 %v309_v46, %v279_v45 }
 0x15b   : > { %v313_v49 = vmax.f32 %v312_v47, 0.0 }
 0x15d   : > { %v315_v50 = vmul.f32 %v314_v48, %v313_v49 }
 0x15f   : > { %v317_v51 = vsel %vm316_vm14, %v315_v50, 0.0 }
 0x160   : > { %318 = vadd.xlane.f32.xlu1 %v317_v51 }
 0x161   : > { %514 = shalt.err (!%p511_p3)
}
 0x162   : > { %436 = dma.vmem_to_hbm [thread:$0]  (%p621_p5), %s342_s8, 128, %s344_s9, %s326_s12   ;;  %v320_v54 = vld [vmem:[%s727_s2 + $0x2] sm:$0x1]  ;;  %vm323_vm15 = vcmask 0  }
 0x163   : > { %s201_s7 = scalar_lea.vmem %s729_s4, %s633_s27 }
 0x1d3   : > { %v319_v55 = vpop.xlane.xlu1 %318 }
 0x1d4   : > { %v321_v56 = vadd.f32 %v320_v54, %v319_v55 }
 0x1d6   : > { %v322_v57 = vsub.f32 0.0, %v321_v56 }
 0x1d8   : > { %324 = vst.msk [vmem:[%s201_s7] sm:$0x1] %vm323_vm15, %v322_v57 }
 0x1d9 PF: > { %p442_p4 = scmp.ge.s32.totalorder %s549_s18, 2  ;;  %s358_s25 = sand.u32 1, %s537_s15  }
 0x1da   : > { %s359_s8 = scalar_lea.sflag [#allocation4], %s358_s25 }
 0x1db   : > { %p439_p5 = pnand %p442_p4, %p625_p6 }
 0x1dd   : > { %p440_p7 = pneg %p439_p5 }
 0x1df   : > { %532 = dma.done.wait (%p440_p7), %s359_s8, 128  }
 0x1e0   : > { %534 = vsyncadd (%p440_p7), %s359_s8, 4294967168  ;;  %p15_p8 = scmp.ge.s32.totalorder %s608_s21, 6   ;;  %s732_s15 = smov %s541_s16 }
 0x1e1   : > { %s733_s16 = smov %s545_s17  ;;  %s734_s17 = smov %s619_s24 }
 0x1e2   : > { %s735_s18 = smov %s608_s21  ;;  %17 = sbr.rel (!%p15_p8) target bundleno = 3 (0x3), region = 79 }
 0x1e7   :  { %371 = vsyncpa [#allocation4], 1 }
 0x1e8   :  { %373 = vsyncpa [#allocation4 + $0x1], 1 }

</bundles_post_ra>
